<compile_context>
chip_gen: v6e
topology: v6e:2x2x1
jax: 0.10.0
libtpu: 0.0.40
codegen_flags: <defaults>
</compile_context>

<pallas_src>
import functools

import jax
import jax.numpy as jnp
from jax import lax
from jax.experimental import pallas as pl
from jax.experimental.pallas import tpu as pltpu


# --------------------------------------------------------------------------
# Spectral norm (PyTorch spectral_norm with dim=1 for ConvTranspose2d,
# n_power_iterations=1, eps=1e-12), in plain JAX (parameter setup / glue).
# --------------------------------------------------------------------------
def spectral_normalize(weight, u, v, n_power_iterations=1, eps=1e-12):
    # weight: (Cin, Cout, kH, kW); PyTorch uses dim=1 for ConvTranspose2d
    cin, cout, kh, kw = weight.shape
    w_mat = jnp.transpose(weight, (1, 0, 2, 3)).reshape(cout, -1)  # (Cout, Cin*kH*kW)
    for _ in range(n_power_iterations):
        v = w_mat.T @ u
        v = v / jnp.maximum(jnp.linalg.norm(v), eps)
        u = w_mat @ v
        u = u / jnp.maximum(jnp.linalg.norm(u), eps)
    sigma = u @ (w_mat @ v)
    return weight / sigma


# --------------------------------------------------------------------------
# Pallas kernel: transposed conv2d (stride=1, pad=0) for a block of Nb batch
# elements, slab-free: kH*kW small MXU matmuls accumulated in f32 registers.
# --------------------------------------------------------------------------
def _trans_conv_kernel(xflat_ref, w_ref, b_ref, o_ref, *, taps, Wp, Lpad, Nb, Cout):
    # xflat_ref: (Nb, Cin, Wflat)     VMEM bf16 -- pre-padded, flattened input rows
    # w_ref    : (kH*kW, Cout, Cin)   VMEM bf16 -- flipped, spectrally-normalized per-tap weights
    # b_ref    : (Cout, 1)            VMEM f32
    # o_ref    : (Nb, Cout, Lpad)     VMEM     -- flat output in padded-width frame, Lpad % 128 == 0
    w_all = w_ref[...]                       # tiny resident weight tile
    bias = b_ref[...]                        # (Cout, 1) f32
    for nb in range(Nb):
        acc = jnp.zeros((Cout, Lpad), jnp.float32)
        for t, (kh, kw) in enumerate(taps):
            off = kh * Wp + kw               # static, contiguous lane-dim offset for this tap
            tap = xflat_ref[nb, :, off:off + Lpad]          # (Cin, Lpad) bf16
            acc = acc + jnp.dot(w_all[t], tap,
                                preferred_element_type=jnp.float32)   # MXU, f32 accumulate
        # Lanes with ow >= Wout (and lanes >= L) hold garbage; the wrapper crops them.
        o_ref[nb] = (acc + bias).astype(o_ref.dtype)


def _pick_block_batch(n, max_nb=8):
    """Largest divisor Nb of n (<= max_nb) that keeps the grid length >= 2 (v7x: 2 TCs)."""
    best = 1
    for nb in range(1, min(n, max_nb) + 1):
        if n % nb == 0 and n // nb >= 2:
            best = nb
    return best


# --------------------------------------------------------------------------
# Wrapper: spectral norm + layout plumbing + pallas_call
# --------------------------------------------------------------------------
def spectral_norm_trans_conv2d(x, weight, bias, u, v, block_batch=None):
    """x: (N, Cin, H, W) NCHW, weight: (Cin, Cout, kH, kW), bias: (Cout,)."""
    if x.ndim != 4:
        raise ValueError("expected 4D input (got {}D input)".format(x.ndim))

    w_sn = spectral_normalize(weight, u, v)                 # (Cin, Cout, kH, kW)
    Cin, Cout, kH, kW = w_sn.shape
    N, _, H, W = x.shape
    Hout = H + kH - 1                                       # stride=1, pad=0, out_pad=0
    Wout = W + kW - 1
    Hp = H + 2 * (kH - 1)
    Wp = W + 2 * (kW - 1)
    L = Hout * Wp                                           # valid flat output length
    Lpad = ((L + 127) // 128) * 128                         # 128-multiple -> unmasked vst
    Wflat = (kH - 1) * Wp + (kW - 1) + Lpad                 # flat padded-input row length

    Nb = block_batch if block_batch is not None else _pick_block_batch(N)
    assert N % Nb == 0, (N, Nb)

    # Pre-pad + flatten the input once in the wrapper (XLA); the kernel then reads
    # contiguous lane slices only. bf16 operands -> single-pass MXU, half the DMA bytes.
    xp = jnp.pad(x, ((0, 0), (0, 0), (kH - 1, kH - 1), (kW - 1, kW - 1)))   # (N,Cin,Hp,Wp)
    xflat = xp.reshape(N, Cin, Hp * Wp)
    xflat = jnp.pad(xflat, ((0, 0), (0, 0), (0, Wflat - Hp * Wp)))
    xflat = xflat.astype(jnp.bfloat16)

    # Spatially flip the kernel and regroup into per-tap (Cout, Cin) blocks, tap-major.
    w_flip = w_sn[:, :, ::-1, ::-1]                                         # (Cin,Cout,kH,kW)
    w_taps = jnp.transpose(w_flip, (2, 3, 1, 0)).reshape(kH * kW, Cout, Cin)
    w_taps = w_taps.astype(jnp.bfloat16)
    b_col = bias.astype(jnp.float32).reshape(Cout, 1)

    taps = tuple((kh, kw) for kh in range(kH) for kw in range(kW))
    kernel = functools.partial(
        _trans_conv_kernel, taps=taps, Wp=Wp, Lpad=Lpad, Nb=Nb, Cout=Cout,
    )

    out_flat = pl.pallas_call(
        kernel,
        out_shape=jax.ShapeDtypeStruct((N, Cout, Lpad), x.dtype),
        grid_spec=pltpu.PrefetchScalarGridSpec(
            num_scalar_prefetch=0,
            grid=(N // Nb,),
            in_specs=[
                pl.BlockSpec((Nb, Cin, Wflat), lambda n: (n, 0, 0)),       # padded input rows
                pl.BlockSpec((kH * kW, Cout, Cin), lambda n: (0, 0, 0)),   # resident weight
                pl.BlockSpec((Cout, 1), lambda n: (0, 0)),                 # resident bias
            ],
            out_specs=pl.BlockSpec((Nb, Cout, Lpad), lambda n: (n, 0, 0)),  # lane-dense output
        ),
        compiler_params=pltpu.CompilerParams(dimension_semantics=("parallel",)),
    )(xflat, w_taps, b_col)

    # Crop the padded-width frame back to NCHW (cheap XLA slice + reshape).
    out = out_flat[:, :, :L].reshape(N, Cout, Hout, Wp)[:, :, :, :Wout]
    return out


# --------------------------------------------------------------------------
# Reference (plain JAX, f32) for verification
# --------------------------------------------------------------------------
def _reference(x, weight, bias, u, v):
    w_sn = spectral_normalize(weight, u, v)
    Cin, Cout, kH, kW = w_sn.shape
    rhs = jnp.transpose(w_sn[:, :, ::-1, ::-1], (1, 0, 2, 3))  # (Cout, Cin, kH, kW)
    y = lax.conv_general_dilated(
        x, rhs, window_strides=(1, 1),
        padding=[(kH - 1, kH - 1), (kW - 1, kW - 1)],
        dimension_numbers=("NCHW", "OIHW", "NCHW"),
        precision=lax.Precision.HIGHEST,
    )
    return y + bias[None, :, None, None]


if __name__ == "__main__":
    # Module config: SpectralNormTransConv2d(in_channels=4, out_channels=8, kernel_size=3)
    N, Cin, H, W = 2, 4, 16, 16
    Cout, Ksz = 8, 3

    key = jax.random.PRNGKey(0)
    kw_, kb_, ku_, kv_, kx_ = jax.random.split(key, 5)

    # Deterministic synthetic parameters (ConvTranspose2d weight shape: (Cin, Cout, kH, kW))
    weight = 0.1 * jax.random.normal(kw_, (Cin, Cout, Ksz, Ksz), dtype=jnp.float32)
    bias = 0.1 * jax.random.normal(kb_, (Cout,), dtype=jnp.float32)
    eps = 1e-12
    u = jax.random.normal(ku_, (Cout,), dtype=jnp.float32)
    u = u / jnp.maximum(jnp.linalg.norm(u), eps)
    v = jax.random.normal(kv_, (Cin * Ksz * Ksz,), dtype=jnp.float32)
    v = v / jnp.maximum(jnp.linalg.norm(v), eps)

    x = jax.random.normal(kx_, (N, Cin, H, W), dtype=jnp.float32)

    out = spectral_norm_trans_conv2d(x, weight, bias, u, v)
    out = jax.block_until_ready(out)

    ref = _reference(x, weight, bias, u, v)
    assert out.shape == (N, Cout, H + Ksz - 1, W + Ksz - 1), out.shape
    err = float(jnp.max(jnp.abs(out - ref)))
    # bf16 matmul operands (f32 accumulation) vs the f32 reference.
    assert jnp.allclose(out, ref, atol=2e-2, rtol=2e-2), err

    print("KERNEL_OK")
</pallas_src>

<mosaic_0001>
module attributes {stable_mosaic.version = 11 : i64} {
  func.func @_trans_conv_kernel(%arg0: i32, %arg1: memref<1x4x426xbf16, #tpu.memory_space<vmem>>, %arg2: memref<9x8x4xbf16, #tpu.memory_space<vmem>>, %arg3: memref<8x1xf32, #tpu.memory_space<vmem>>, %arg4: memref<1x8x384xf32, #tpu.memory_space<vmem>>) attributes {dimension_semantics = [#tpu.dimension_semantics<parallel>], iteration_bounds = array<i64: 2>, scalar_prefetch = 0 : i64, scratch_operands = 0 : i64, tpu.core_type = #tpu.core_type<tc>, window_params = [{transform_indices = @transform_0, window_bounds = array<i64: 1, 4, 426>}, {pipeline_mode = #tpu.pipeline_mode<synchronous>, transform_indices = @transform_1, window_bounds = array<i64: 9, 8, 4>}, {pipeline_mode = #tpu.pipeline_mode<synchronous>, transform_indices = @transform_2, window_bounds = array<i64: 8, 1>}, {transform_indices = @transform_3, window_bounds = array<i64: 1, 8, 384>}]} {
    %c0 = arith.constant 0 : index
    %c0_0 = arith.constant 0 : index
    %c0_1 = arith.constant 0 : index
    %0 = vector.load %arg2[%c0, %c0_0, %c0_1] : memref<9x8x4xbf16, #tpu.memory_space<vmem>>, vector<9x8x4xbf16>
    %c0_2 = arith.constant 0 : index
    %c0_3 = arith.constant 0 : index
    %1 = vector.load %arg3[%c0_2, %c0_3] : memref<8x1xf32, #tpu.memory_space<vmem>>, vector<8x1xf32>
    %cst = arith.constant 0.000000e+00 : f32
    %2 = vector.broadcast %cst : f32 to vector<8x384xf32>
    %c0_4 = arith.constant 0 : index
    %c0_5 = arith.constant 0 : index
    %c0_6 = arith.constant 0 : index
    %3 = vector.load %arg1[%c0_4, %c0_5, %c0_6] : memref<1x4x426xbf16, #tpu.memory_space<vmem>>, vector<1x4x384xbf16>
    %4 = vector.shape_cast %3 : vector<1x4x384xbf16> to vector<4x384xbf16>
    %5 = vector.extract_strided_slice %0 {offsets = [0, 0, 0], sizes = [1, 8, 4], strides = [1, 1, 1]} : vector<9x8x4xbf16> to vector<1x8x4xbf16>
    %6 = vector.shape_cast %5 : vector<1x8x4xbf16> to vector<8x4xbf16>
    %cst_7 = arith.constant dense<0.000000e+00> : vector<8x384xf32>
    %7 = tpu.matmul %6, %4, %cst_7 {dimension_numbers = #tpu.dot_dimension_numbers<[1], [0], [0], [1], [0, 0, 1, 1], [], []>} : vector<8x4xbf16>, vector<4x384xbf16>, vector<8x384xf32> -> vector<8x384xf32>
    %8 = arith.addf %2, %7 : vector<8x384xf32>
    %c0_8 = arith.constant 0 : index
    %c0_9 = arith.constant 0 : index
    %c1 = arith.constant 1 : index
    %9 = vector.load %arg1[%c0_8, %c0_9, %c1] : memref<1x4x426xbf16, #tpu.memory_space<vmem>>, vector<1x4x384xbf16>
    %10 = vector.shape_cast %9 : vector<1x4x384xbf16> to vector<4x384xbf16>
    %11 = vector.extract_strided_slice %0 {offsets = [1, 0, 0], sizes = [1, 8, 4], strides = [1, 1, 1]} : vector<9x8x4xbf16> to vector<1x8x4xbf16>
    %12 = vector.shape_cast %11 : vector<1x8x4xbf16> to vector<8x4xbf16>
    %cst_10 = arith.constant dense<0.000000e+00> : vector<8x384xf32>
    %13 = tpu.matmul %12, %10, %cst_10 {dimension_numbers = #tpu.dot_dimension_numbers<[1], [0], [0], [1], [0, 0, 1, 1], [], []>} : vector<8x4xbf16>, vector<4x384xbf16>, vector<8x384xf32> -> vector<8x384xf32>
    %14 = arith.addf %8, %13 : vector<8x384xf32>
    %c0_11 = arith.constant 0 : index
    %c0_12 = arith.constant 0 : index
    %c2 = arith.constant 2 : index
    %15 = vector.load %arg1[%c0_11, %c0_12, %c2] : memref<1x4x426xbf16, #tpu.memory_space<vmem>>, vector<1x4x384xbf16>
    %16 = vector.shape_cast %15 : vector<1x4x384xbf16> to vector<4x384xbf16>
    %17 = vector.extract_strided_slice %0 {offsets = [2, 0, 0], sizes = [1, 8, 4], strides = [1, 1, 1]} : vector<9x8x4xbf16> to vector<1x8x4xbf16>
    %18 = vector.shape_cast %17 : vector<1x8x4xbf16> to vector<8x4xbf16>
    %cst_13 = arith.constant dense<0.000000e+00> : vector<8x384xf32>
    %19 = tpu.matmul %18, %16, %cst_13 {dimension_numbers = #tpu.dot_dimension_numbers<[1], [0], [0], [1], [0, 0, 1, 1], [], []>} : vector<8x4xbf16>, vector<4x384xbf16>, vector<8x384xf32> -> vector<8x384xf32>
    %20 = arith.addf %14, %19 : vector<8x384xf32>
    %c0_14 = arith.constant 0 : index
    %c0_15 = arith.constant 0 : index
    %c20 = arith.constant 20 : index
    %21 = vector.load %arg1[%c0_14, %c0_15, %c20] : memref<1x4x426xbf16, #tpu.memory_space<vmem>>, vector<1x4x384xbf16>
    %22 = vector.shape_cast %21 : vector<1x4x384xbf16> to vector<4x384xbf16>
    %23 = vector.extract_strided_slice %0 {offsets = [3, 0, 0], sizes = [1, 8, 4], strides = [1, 1, 1]} : vector<9x8x4xbf16> to vector<1x8x4xbf16>
    %24 = vector.shape_cast %23 : vector<1x8x4xbf16> to vector<8x4xbf16>
    %cst_16 = arith.constant dense<0.000000e+00> : vector<8x384xf32>
    %25 = tpu.matmul %24, %22, %cst_16 {dimension_numbers = #tpu.dot_dimension_numbers<[1], [0], [0], [1], [0, 0, 1, 1], [], []>} : vector<8x4xbf16>, vector<4x384xbf16>, vector<8x384xf32> -> vector<8x384xf32>
    %26 = arith.addf %20, %25 : vector<8x384xf32>
    %c0_17 = arith.constant 0 : index
    %c0_18 = arith.constant 0 : index
    %c21 = arith.constant 21 : index
    %27 = vector.load %arg1[%c0_17, %c0_18, %c21] : memref<1x4x426xbf16, #tpu.memory_space<vmem>>, vector<1x4x384xbf16>
    %28 = vector.shape_cast %27 : vector<1x4x384xbf16> to vector<4x384xbf16>
    %29 = vector.extract_strided_slice %0 {offsets = [4, 0, 0], sizes = [1, 8, 4], strides = [1, 1, 1]} : vector<9x8x4xbf16> to vector<1x8x4xbf16>
    %30 = vector.shape_cast %29 : vector<1x8x4xbf16> to vector<8x4xbf16>
    %cst_19 = arith.constant dense<0.000000e+00> : vector<8x384xf32>
    %31 = tpu.matmul %30, %28, %cst_19 {dimension_numbers = #tpu.dot_dimension_numbers<[1], [0], [0], [1], [0, 0, 1, 1], [], []>} : vector<8x4xbf16>, vector<4x384xbf16>, vector<8x384xf32> -> vector<8x384xf32>
    %32 = arith.addf %26, %31 : vector<8x384xf32>
    %c0_20 = arith.constant 0 : index
    %c0_21 = arith.constant 0 : index
    %c22 = arith.constant 22 : index
    %33 = vector.load %arg1[%c0_20, %c0_21, %c22] : memref<1x4x426xbf16, #tpu.memory_space<vmem>>, vector<1x4x384xbf16>
    %34 = vector.shape_cast %33 : vector<1x4x384xbf16> to vector<4x384xbf16>
    %35 = vector.extract_strided_slice %0 {offsets = [5, 0, 0], sizes = [1, 8, 4], strides = [1, 1, 1]} : vector<9x8x4xbf16> to vector<1x8x4xbf16>
    %36 = vector.shape_cast %35 : vector<1x8x4xbf16> to vector<8x4xbf16>
    %cst_22 = arith.constant dense<0.000000e+00> : vector<8x384xf32>
    %37 = tpu.matmul %36, %34, %cst_22 {dimension_numbers = #tpu.dot_dimension_numbers<[1], [0], [0], [1], [0, 0, 1, 1], [], []>} : vector<8x4xbf16>, vector<4x384xbf16>, vector<8x384xf32> -> vector<8x384xf32>
    %38 = arith.addf %32, %37 : vector<8x384xf32>
    %c0_23 = arith.constant 0 : index
    %c0_24 = arith.constant 0 : index
    %c40 = arith.constant 40 : index
    %39 = vector.load %arg1[%c0_23, %c0_24, %c40] : memref<1x4x426xbf16, #tpu.memory_space<vmem>>, vector<1x4x384xbf16>
    %40 = vector.shape_cast %39 : vector<1x4x384xbf16> to vector<4x384xbf16>
    %41 = vector.extract_strided_slice %0 {offsets = [6, 0, 0], sizes = [1, 8, 4], strides = [1, 1, 1]} : vector<9x8x4xbf16> to vector<1x8x4xbf16>
    %42 = vector.shape_cast %41 : vector<1x8x4xbf16> to vector<8x4xbf16>
    %cst_25 = arith.constant dense<0.000000e+00> : vector<8x384xf32>
    %43 = tpu.matmul %42, %40, %cst_25 {dimension_numbers = #tpu.dot_dimension_numbers<[1], [0], [0], [1], [0, 0, 1, 1], [], []>} : vector<8x4xbf16>, vector<4x384xbf16>, vector<8x384xf32> -> vector<8x384xf32>
    %44 = arith.addf %38, %43 : vector<8x384xf32>
    %c0_26 = arith.constant 0 : index
    %c0_27 = arith.constant 0 : index
    %c41 = arith.constant 41 : index
    %45 = vector.load %arg1[%c0_26, %c0_27, %c41] : memref<1x4x426xbf16, #tpu.memory_space<vmem>>, vector<1x4x384xbf16>
    %46 = vector.shape_cast %45 : vector<1x4x384xbf16> to vector<4x384xbf16>
    %47 = vector.extract_strided_slice %0 {offsets = [7, 0, 0], sizes = [1, 8, 4], strides = [1, 1, 1]} : vector<9x8x4xbf16> to vector<1x8x4xbf16>
    %48 = vector.shape_cast %47 : vector<1x8x4xbf16> to vector<8x4xbf16>
    %cst_28 = arith.constant dense<0.000000e+00> : vector<8x384xf32>
    %49 = tpu.matmul %48, %46, %cst_28 {dimension_numbers = #tpu.dot_dimension_numbers<[1], [0], [0], [1], [0, 0, 1, 1], [], []>} : vector<8x4xbf16>, vector<4x384xbf16>, vector<8x384xf32> -> vector<8x384xf32>
    %50 = arith.addf %44, %49 : vector<8x384xf32>
    %c0_29 = arith.constant 0 : index
    %c0_30 = arith.constant 0 : index
    %c42 = arith.constant 42 : index
    %51 = vector.load %arg1[%c0_29, %c0_30, %c42] : memref<1x4x426xbf16, #tpu.memory_space<vmem>>, vector<1x4x384xbf16>
    %52 = vector.shape_cast %51 : vector<1x4x384xbf16> to vector<4x384xbf16>
    %53 = vector.extract_strided_slice %0 {offsets = [8, 0, 0], sizes = [1, 8, 4], strides = [1, 1, 1]} : vector<9x8x4xbf16> to vector<1x8x4xbf16>
    %54 = vector.shape_cast %53 : vector<1x8x4xbf16> to vector<8x4xbf16>
    %cst_31 = arith.constant dense<0.000000e+00> : vector<8x384xf32>
    %55 = tpu.matmul %54, %52, %cst_31 {dimension_numbers = #tpu.dot_dimension_numbers<[1], [0], [0], [1], [0, 0, 1, 1], [], []>} : vector<8x4xbf16>, vector<4x384xbf16>, vector<8x384xf32> -> vector<8x384xf32>
    %56 = arith.addf %50, %55 : vector<8x384xf32>
    %57 = vector.broadcast %1 : vector<8x1xf32> to vector<8x384xf32>
    %58 = arith.addf %56, %57 : vector<8x384xf32>
    %c0_32 = arith.constant 0 : index
    %c0_33 = arith.constant 0 : index
    %c0_34 = arith.constant 0 : index
    %59 = vector.load %arg4[%c0_32, %c0_33, %c0_34] : memref<1x8x384xf32, #tpu.memory_space<vmem>>, vector<1x8x384xf32>
    %60 = vector.shape_cast %59 : vector<1x8x384xf32> to vector<8x384xf32>
    %61 = vector.shape_cast %58 : vector<8x384xf32> to vector<1x8x384xf32>
    tpu.vector_store %arg4[%c0_32, %c0_33, %c0_34], %61 {strides = array<i32>} : memref<1x8x384xf32, #tpu.memory_space<vmem>>, vector<1x8x384xf32>,
    return
  }
  func.func @transform_0(%arg0: i32) -> (i32, i32, i32) {
    %c0_i32 = arith.constant 0 : i32
    %c0_i32_0 = arith.constant 0 : i32
    %c0_i32_1 = arith.constant 0 : i32
    return %arg0, %c0_i32, %c0_i32_0 : i32, i32, i32
  }
  func.func @transform_1(%arg0: i32) -> (i32, i32, i32) {
    %c0_i32 = arith.constant 0 : i32
    %c0_i32_0 = arith.constant 0 : i32
    %c0_i32_1 = arith.constant 0 : i32
    %c0_i32_2 = arith.constant 0 : i32
    return %c0_i32, %c0_i32_0, %c0_i32_1 : i32, i32, i32
  }
  func.func @transform_2(%arg0: i32) -> (i32, i32) {
    %c0_i32 = arith.constant 0 : i32
    %c0_i32_0 = arith.constant 0 : i32
    %c0_i32_1 = arith.constant 0 : i32
    return %c0_i32, %c0_i32_0 : i32, i32
  }
  func.func @transform_3(%arg0: i32) -> (i32, i32, i32) {
    %c0_i32 = arith.constant 0 : i32
    %c0_i32_0 = arith.constant 0 : i32
    %c0_i32_1 = arith.constant 0 : i32
    return %arg0, %c0_i32, %c0_i32_0 : i32, i32, i32
  }
}

</mosaic_0001>

<bundles_post_ra>
// kernel: tpu_custom_call.1
= control target key start
LH: loop header
LB: loop body
LE: loop exit
PB: predicated region body
PF: predicated region fallthrough
CT: control target
= control target key end

     0   :  { %8 = vsyncpa [#allocation3], 0  ;;  %s1874_s0 = inlined_call_operand.vmem [shape: bf16[2,4,426], index: 0, kind: input, shape index: {}]   ;;  %s1875_s1 = inlined_call_operand.vmem [shape: bf16[9,8,4], index: 1, kind: input, shape index: {}]   ;;  %s1876_s2 = inlined_call_operand.vmem [shape: f32[8,1], index: 2, kind: input, shape index: {}]   ;;  %s1877_s3 = inlined_call_operand.hbm [shape: f32[2,8,384], index: 3, kind: output, shape index: {}]  }
   0x1   :  { %10 = vsyncpa [#allocation3 + $0x1], 0  ;;  %s1651_s12 = smov 0   ;;  %s1653_s13 = smov 0  }
   0x2   :  { %s1655_s14 = smov 0   ;;  %s1657_s15 = smov 0  }
   0x3 LB: > { %s1672_s16 = sadd.s32 4294967295, %s1616_s15   ;;  %s1391_s17 = sadd.s32 4294967294, %s1616_s15   ;;  %s1616_s15 = sphi %s1657_s15, %s1883_s15   ;;  %s1612_s14 = sphi %s1655_s14, %s1882_s14   ;;  %s1608_s13 = sphi %s1653_s13, %s1881_s13   ;;  %s1604_s12 = sphi %s1651_s12, %s1880_s12  }
   0x4   : > { %s1676_s18 = sadd.s32 1, %s1616_s15   ;;  %s91_s19 = sadd.s32 1, %s1612_s14 }
   0x5   : > { %s88_s20 = ssub.s32 %s1616_s15, %s1676_s18  ;;  %p101_p0 = scmp.ne.s32.totalorder %s1612_s14, %s1608_s13 }
   0x6   : > { %p89_p1 = scmp.eq.s32.totalorder %s88_s20, 0  ;;  %p102_p2 = scmp.eq.s32.totalorder %s1672_s16, 1 }
   0x7   : > { %p107_p3 = scmp.ne.s32.totalorder %s1608_s13, %s1604_s12  ;;  %p108_p4 = scmp.eq.s32.totalorder %s1391_s17, 1 }
   0x8   : > { %s1687_s21 = scalar_select %p89_p1, %s1612_s14, %s91_s19  }
   0x9   : > { %p1689_p5 = por %p102_p2, %p101_p0  ;;  %p1693_p6 = por %p108_p4, %p107_p3 }
   0xa   : > { %p1394_p7 = scmp.ge.s32.totalorder %s1616_s15, 1  ;;  %p140_p8 = scmp.lt.s32.totalorder %s1616_s15, 3 }
   0xc   : > { %p141_p9 = pnand %p1394_p7, %p140_p8 }
   0xd   : > { %p164_p10 = scmp.lt.s32.totalorder (!%p141_p9), %s1672_s16, 1  ;;  %s1622_s29 = smov (!%p141_p9), 127  }
   0xe   : > { %144 = sbr.rel (%p141_p9) target bundleno = 428 (0x1ac), region = 32  ;;  %s1623_s30 = smov (!%p141_p9), 126  }
   0xf   : > { %s1624_s4 = smov (!%p141_p9), 108   ;;  %s1625_s5 = smov (!%p141_p9), 107  }
  0x10   : > { %s1626_s6 = smov (!%p141_p9), 106   ;;  %s1627_s7 = smov (!%p141_p9), 88  }
  0x11   : > { %s1628_s8 = smov (!%p141_p9), 87   ;;  %s1629_s9 = smov (!%p141_p9), 86  }
  0x12   : > { %s161_s17 = sand.u32 (!%p141_p9), 1, %s1608_s13   ;;  %s1501_s20 = smul.u32 (!%p141_p9), 384, %s1672_s16 }
  0x13   : > { %v187_v0 = vlaneseq  ;;  %v1618_v1 = vmov 1983009808   ;;  %s165_s24 = scalar_select %p164_p10, %s1672_s16, 1  ;;  %v1619_v5 = vmov 0.0   ;;  %v1620_v6 = vmov 0   ;;  %v179_v18 = vld [vmem:[%s1876_s2] sm:$0xff] }
  0x14   : > { %v185_v2 = vunpack.c.l.s4 %v1618_v1  ;;  %1446 = vmatprep.subr.bf16.mxu1 %v1619_v5  ;;  %258 = vmatprep.mubr.bf16.mxu0 %v1620_v6  ;;  %vm1621_vm0 = vmmov 0   ;;  %vm208_vm1 = vcmask 1039360   ;;  %vm216_vm2 = vcmask 1041408   ;;  %v171_v28 = vld [vmem:[%s1875_s1 + $0x4] sm:$0xf]  ;;  %s1500_s19 = smul.u32 24, %s161_s17 }
  0x15   : > { %v188_v3 = vshrl.u32 %v187_v0, 7  ;;  %s1427_s25 = sshll.u32 %s165_s24, 3  ;;  %1553 = vset.pattern.permute.xlu0 %v1620_v6  ;;  %1448 = vmatprep.mubr.msk.bf16.mxu1 %vm1621_vm0, %v1619_v5  ;;  %vm212_vm3 = vcmask 31744   ;;  %vm444_vm4 = vcmask 1031168   ;;  %v170_v39 = vld [vmem:[%s1875_s1] sm:$0xf] }
  0x16   : > { %v186_v4 = vunpack.c.0.s8 %v185_v2  ;;  %s168_s28 = scalar_lea.vmem %s1874_s0, %s1427_s25  ;;  %vm571_vm5 = vcmask 883712   ;;  %v172_v49 = vld [vmem:[%s1875_s1 + $0x8] sm:$0xf]  ;;  %vm698_vm6 = vcmask 875520   ;;  %v173_v59 = vld [vmem:[%s1875_s1 + $0xc] sm:$0xf] }
  0x17   : > { %v181_v8 = vld [vmem:[%s168_s28] sm:$0xff]  ;;  %vm825_vm7 = vcmask 867328   ;;  %vm952_vm8 = vcmask 719872   ;;  %vm1079_vm9 = vcmask 711680   ;;  %vm1206_vm10 = vcmask 703488   ;;  %s163_s24 = scalar_lea.vmem [#allocation2], %s1500_s19 }
  0x18   : > { %v189_v7 = vsub.s32 %v186_v4, %v188_v3  ;;  %v180_v9 = vld [vmem:[%s168_s28] sm:$0x3f]  ;;  %v183_v11 = vcombine.high %v181_v8, %v181_v8  ;;  %s1332_s25 = sshll.u32 %s163_s24, 4  ;;  %s1831_s28 = scalar_lea.hbm %s1877_s3, %s1501_s20  ;;  %s1833_s25 = int_to_ptr.vmem [resolvable:$true] %s1332_s25 }
  0x19   : > { %v308_v13 = vcombine.high %v180_v9, %v180_v9  ;;  %s1318_s16 = scalar_lea.sflag [#allocation3], %s161_s17 }
  0x1a   : > { %v190_v10 = vrot.slane %v181_v8, %v189_v7  ;;  %v1709_v12 = vrot.slane %v180_v9, %v189_v7  ;;  %v197_v15 = vrot.slane %v183_v11, %v189_v7 }
  0x1b   : > { %v1711_v16 = vrot.slane %v308_v13, %v189_v7  ;;  %v174_v7 = vld [vmem:[%s1875_s1 + $0x10] sm:$0xf] }
  0x1c   : > { %200 = vrot.lane.b32.xlu0 %v190_v10, %s1622_s29  ;;  %v198_v14 = vcombine.high %v190_v10, %v190_v10  ;;  %204 = vrot.lane.b32.xlu1 %v197_v15, %s1622_s29  ;;  %v199_v17 = vcombine.high %v197_v15, %v197_v15  ;;  %v323_v22 = vcombine.high %v1709_v12, %v1709_v12  ;;  %v328_v31 = vsel %vm216_vm2, %v1709_v12, 0 }
  0x1d   : > { %v334_v33 = vsel %vm216_vm2, %v1711_v16, 0 }
  0x20   : > { %202 = vrot.lane.b32.xlu0 %v198_v14, %s1622_s29  ;;  %206 = vrot.lane.b32.xlu1 %v199_v17, %s1622_s29  ;;  %s1556_s29 = scalar_lea.vmem %s1833_s25, 384 }
  0x21   : > { %p1557_p11 = scmp.ne.s32.totalorder %s1833_s25, %s1556_s29 }
  0x23   : > { %p1558_p12 = pnand %p1557_p11, %p1689_p5 }
  0x24   : > { %436 = vrot.lane.b32.xlu0 %v190_v10, %s1623_s30  ;;  %438 = vrot.lane.b32.xlu1 %v198_v14, %s1623_s30 }
  0x25   : > { %p1559_p13 = pneg %p1558_p12 }
  0x28   : > { %440 = vrot.lane.b32.xlu0 %v197_v15, %s1623_s30  ;;  %442 = vrot.lane.b32.xlu1 %v199_v17, %s1623_s30  ;;  %s1630_s30 = smov [#allocation2]  }
  0x2c   : > { %563 = vrot.lane.b32.xlu0 %v190_v10, %s1624_s4  ;;  %565 = vrot.lane.b32.xlu1 %v198_v14, %s1624_s4 }
  0x30   : > { %567 = vrot.lane.b32.xlu0 %v197_v15, %s1624_s4  ;;  %569 = vrot.lane.b32.xlu1 %v199_v17, %s1624_s4  ;;  %s1560_s4 = sshll.u32 %s1630_s30, 4  ;;  %s1561_s4 = int_to_ptr.vmem [resolvable:$false] %s1560_s4 }
  0x31   : > { %p1563_p0 = scmp.lt.s32.totalorder %s1833_s25, %s1561_s4 }
  0x34   : > { %690 = vrot.lane.b32.xlu0 %v190_v10, %s1625_s5  ;;  %692 = vrot.lane.b32.xlu1 %v198_v14, %s1625_s5 }
  0x38   : > { %694 = vrot.lane.b32.xlu0 %v197_v15, %s1625_s5  ;;  %696 = vrot.lane.b32.xlu1 %v199_v17, %s1625_s5  ;;  %s1562_s5 = scalar_lea.vmem %s1561_s4, 768 }
  0x39   : > { %p1564_p1 = scmp.lt.s32.totalorder %s1562_s5, %s1556_s29 }
  0x3b   : > { %p1565_p2 = por %p1564_p1, %p1563_p0 }
  0x3c   : > { %817 = vrot.lane.b32.xlu0 %v190_v10, %s1626_s6  ;;  %819 = vrot.lane.b32.xlu1 %v198_v14, %s1626_s6 }
  0x3d   : > { %p1566_p3 = pnand %p1565_p2, %p1559_p13 }
  0x40   : > { %821 = vrot.lane.b32.xlu0 %v197_v15, %s1626_s6  ;;  %823 = vrot.lane.b32.xlu1 %v199_v17, %s1626_s6 }
  0x44   : > { %944 = vrot.lane.b32.xlu0 %v190_v10, %s1627_s7  ;;  %946 = vrot.lane.b32.xlu1 %v198_v14, %s1627_s7 }
  0x48   : > { %948 = vrot.lane.b32.xlu0 %v197_v15, %s1627_s7  ;;  %950 = vrot.lane.b32.xlu1 %v199_v17, %s1627_s7 }
  0x4c   : > { %1071 = vrot.lane.b32.xlu0 %v190_v10, %s1628_s8  ;;  %1073 = vrot.lane.b32.xlu1 %v198_v14, %s1628_s8 }
  0x50   : > { %1075 = vrot.lane.b32.xlu0 %v197_v15, %s1628_s8  ;;  %1077 = vrot.lane.b32.xlu1 %v199_v17, %s1628_s8 }
  0x54   : > { %1198 = vrot.lane.b32.xlu0 %v190_v10, %s1629_s9  ;;  %1200 = vrot.lane.b32.xlu1 %v198_v14, %s1629_s9 }
  0x58   : > { %1202 = vrot.lane.b32.xlu0 %v197_v15, %s1629_s9  ;;  %1204 = vrot.lane.b32.xlu1 %v199_v17, %s1629_s9  ;;  %v175_v17 = vld [vmem:[%s1875_s1 + $0x14] sm:$0xf] }
  0x5c   : > { %1308 = vperm.xlu0 %1553, %v179_v18  }
  0x8e   : > { %v201_v19 = vpop.permute.xlu0 %200  ;;  %v205_v20 = vpop.permute.xlu1 %204 }
  0x92   : > { %v203_v21 = vpop.permute.xlu0 %202  ;;  %v207_v25 = vpop.permute.xlu1 %206 }
  0x93   : > { %v210_v23 = vsel %vm208_vm1, %v203_v21, %v205_v20  ;;  %v209_v24 = vsel %vm208_vm1, %v201_v19, %v203_v21  ;;  %v211_v27 = vsel %vm208_vm1, %v205_v20, %v207_v25 }
  0x94   : > { %1397 = vmatprep.subr.msk.bf16.mxu0 %vm216_vm2, %v210_v23  ;;  %v218_v26 = vsel %vm216_vm2, %v209_v24, 0  ;;  %v224_v29 = vsel %vm216_vm2, %v211_v27, 0  ;;  %v176_v27 = vld [vmem:[%s1875_s1 + $0x18] sm:$0xf] }
  0x95   : > { %241 = vmatpush1.bf16.msra.mxu0 %v218_v26  ;;  %1447 = vmatpush3.bf16.msra.mxu1 %v224_v29 }
  0x96   : > { %v437_v30 = vpop.permute.xlu0 %436  ;;  %1400 = vmatprep.subr.msk.bf16.mxu0 %vm216_vm2, %v323_v22  ;;  %1452 = vmatprep.subr.bf16.mxu1 %v1619_v5  ;;  %v439_v32 = vpop.permute.xlu1 %438 }
  0x97   : > { %v445_v35 = vsel %vm444_vm4, %v437_v30, %v439_v32 }
  0x98   : > { %1398 = vmatmul.mubr.msk.bf16.vlgmr.msra.gmra.mxu0 %vm212_vm3, %v171_v28  ;;  %1449 = vmatmul.mubr.msk.bf16.vlgmr.msra.gmra.mxu1 %vm212_vm3, %v171_v28  ;;  %v452_v40 = vsel %vm216_vm2, %v445_v35, 0 }
  0x99   : > { %351 = vmatpush1.bf16.msra.mxu0 %v328_v31  ;;  %368 = vmatprep.mubr.bf16.mxu0 %v1620_v6 }
  0x9a   : > { %v441_v34 = vpop.permute.xlu0 %440  ;;  %1453 = vmatpush3.bf16.msra.mxu1 %v334_v33  ;;  %1454 = vmatprep.mubr.msk.bf16.mxu1 %vm1621_vm0, %v1619_v5  ;;  %v443_v37 = vpop.permute.xlu1 %442 }
  0x9b   : > { %v446_v36 = vsel %vm444_vm4, %v439_v32, %v441_v34  ;;  %1458 = vmatprep.subr.bf16.mxu1 %v1619_v5  ;;  %v447_v38 = vsel %vm444_vm4, %v441_v34, %v443_v37  ;;  %v177_v37 = vld [vmem:[%s1875_s1 + $0x1c] sm:$0xf] }
  0x9c   : > { %1403 = vmatprep.subr.msk.bf16.mxu0 %vm216_vm2, %v446_v36  ;;  %v458_v42 = vsel %vm216_vm2, %v447_v38, 0 }
  0x9e   : > { %v564_v41 = vpop.permute.xlu0 %563  ;;  %v566_v43 = vpop.permute.xlu1 %565 }
  0x9f   : > { %v572_v45 = vsel %vm571_vm5, %v564_v41, %v566_v43 }
  0xa0   : > { %1401 = vmatmul.mubr.msk.bf16.vlgmr.msra.gmra.mxu0 %vm212_vm3, %v170_v39  ;;  %1455 = vmatmul.mubr.msk.bf16.vlgmr.msra.gmra.mxu1 %vm212_vm3, %v170_v39  ;;  %v579_v50 = vsel %vm216_vm2, %v572_v45, 0 }
  0xa1   : > { %475 = vmatpush1.bf16.msra.mxu0 %v452_v40  ;;  %492 = vmatprep.mubr.bf16.mxu0 %v1620_v6  ;;  %v178_v40 = vld [vmem:[%s1875_s1 + $0x20] sm:$0xf] }
  0xa2   : > { %v568_v44 = vpop.permute.xlu0 %567  ;;  %1459 = vmatpush3.bf16.msra.mxu1 %v458_v42  ;;  %1460 = vmatprep.mubr.msk.bf16.mxu1 %vm1621_vm0, %v1619_v5  ;;  %v570_v47 = vpop.permute.xlu1 %569 }
  0xa3   : > { %v573_v46 = vsel %vm571_vm5, %v566_v43, %v568_v44  ;;  %1464 = vmatprep.subr.bf16.mxu1 %v1619_v5  ;;  %v574_v48 = vsel %vm571_vm5, %v568_v44, %v570_v47 }
  0xa4   : > { %1406 = vmatprep.subr.msk.bf16.mxu0 %vm216_vm2, %v573_v46  ;;  %v585_v52 = vsel %vm216_vm2, %v574_v48, 0 }
  0xa6   : > { %v691_v51 = vpop.permute.xlu0 %690  ;;  %v693_v53 = vpop.permute.xlu1 %692 }
  0xa7   : > { %v699_v55 = vsel %vm698_vm6, %v691_v51, %v693_v53 }
  0xa8   : > { %1404 = vmatmul.mubr.msk.bf16.vlgmr.msra.gmra.mxu0 %vm212_vm3, %v172_v49  ;;  %1461 = vmatmul.mubr.msk.bf16.vlgmr.msra.gmra.mxu1 %vm212_vm3, %v172_v49  ;;  %v706_v60 = vsel %vm216_vm2, %v699_v55, 0 }
  0xa9   : > { %602 = vmatpush1.bf16.msra.mxu0 %v579_v50  ;;  %619 = vmatprep.mubr.bf16.mxu0 %v1620_v6 }
  0xaa   : > { %v695_v54 = vpop.permute.xlu0 %694  ;;  %1465 = vmatpush3.bf16.msra.mxu1 %v585_v52  ;;  %1466 = vmatprep.mubr.msk.bf16.mxu1 %vm1621_vm0, %v1619_v5  ;;  %v697_v57 = vpop.permute.xlu1 %696 }
  0xab   : > { %v700_v56 = vsel %vm698_vm6, %v693_v53, %v695_v54  ;;  %1470 = vmatprep.subr.bf16.mxu1 %v1619_v5  ;;  %v701_v58 = vsel %vm698_vm6, %v695_v54, %v697_v57 }
  0xac   : > { %1409 = vmatprep.subr.msk.bf16.mxu0 %vm216_vm2, %v700_v56  ;;  %v712_v62 = vsel %vm216_vm2, %v701_v58, 0 }
  0xae   : > { %v818_v61 = vpop.permute.xlu0 %817  ;;  %v820_v63 = vpop.permute.xlu1 %819 }
  0xaf   : > { %v826_v1 = vsel %vm825_vm7, %v818_v61, %v820_v63 }
  0xb0   : > { %1407 = vmatmul.mubr.msk.bf16.vlgmr.msra.gmra.mxu0 %vm212_vm3, %v173_v59  ;;  %1467 = vmatmul.mubr.msk.bf16.vlgmr.msra.gmra.mxu1 %vm212_vm3, %v173_v59  ;;  %v833_v8 = vsel %vm216_vm2, %v826_v1, 0 }
  0xb1   : > { %729 = vmatpush1.bf16.msra.mxu0 %v706_v60  ;;  %746 = vmatprep.mubr.bf16.mxu0 %v1620_v6 }
  0xb2   : > { %v822_v0 = vpop.permute.xlu0 %821  ;;  %1471 = vmatpush3.bf16.msra.mxu1 %v712_v62  ;;  %1472 = vmatprep.mubr.msk.bf16.mxu1 %vm1621_vm0, %v1619_v5  ;;  %v824_v3 = vpop.permute.xlu1 %823 }
  0xb3   : > { %v827_v2 = vsel %vm825_vm7, %v820_v63, %v822_v0  ;;  %1476 = vmatprep.subr.bf16.mxu1 %v1619_v5  ;;  %v828_v4 = vsel %vm825_vm7, %v822_v0, %v824_v3 }
  0xb4   : > { %1412 = vmatprep.subr.msk.bf16.mxu0 %vm216_vm2, %v827_v2  ;;  %v839_v10 = vsel %vm216_vm2, %v828_v4, 0 }
  0xb6   : > { %v945_v9 = vpop.permute.xlu0 %944  ;;  %v947_v11 = vpop.permute.xlu1 %946 }
  0xb7   : > { %v953_v13 = vsel %vm952_vm8, %v945_v9, %v947_v11 }
  0xb8   : > { %1410 = vmatmul.mubr.msk.bf16.vlgmr.msra.gmra.mxu0 %vm212_vm3, %v174_v7  ;;  %1473 = vmatmul.mubr.msk.bf16.vlgmr.msra.gmra.mxu1 %vm212_vm3, %v174_v7  ;;  %v960_v18 = vsel %vm216_vm2, %v953_v13, 0 }
  0xb9   : > { %856 = vmatpush1.bf16.msra.mxu0 %v833_v8  ;;  %873 = vmatprep.mubr.bf16.mxu0 %v1620_v6 }
  0xba   : > { %v949_v12 = vpop.permute.xlu0 %948  ;;  %1477 = vmatpush3.bf16.msra.mxu1 %v839_v10  ;;  %1478 = vmatprep.mubr.msk.bf16.mxu1 %vm1621_vm0, %v1619_v5  ;;  %v951_v15 = vpop.permute.xlu1 %950 }
  0xbb   : > { %v954_v14 = vsel %vm952_vm8, %v947_v11, %v949_v12  ;;  %1482 = vmatprep.subr.bf16.mxu1 %v1619_v5  ;;  %v955_v16 = vsel %vm952_vm8, %v949_v12, %v951_v15 }
  0xbc   : > { %1415 = vmatprep.subr.msk.bf16.mxu0 %vm216_vm2, %v954_v14  ;;  %v966_v20 = vsel %vm216_vm2, %v955_v16, 0 }
  0xbe   : > { %v1072_v19 = vpop.permute.xlu0 %1071  ;;  %v1074_v21 = vpop.permute.xlu1 %1073 }
  0xbf   : > { %v1080_v23 = vsel %vm1079_vm9, %v1072_v19, %v1074_v21 }
  0xc0   : > { %1413 = vmatmul.mubr.msk.bf16.vlgmr.msra.gmra.mxu0 %vm212_vm3, %v175_v17  ;;  %1479 = vmatmul.mubr.msk.bf16.vlgmr.msra.gmra.mxu1 %vm212_vm3, %v175_v17  ;;  %v1087_v28 = vsel %vm216_vm2, %v1080_v23, 0 }
  0xc1   : > { %983 = vmatpush1.bf16.msra.mxu0 %v960_v18  ;;  %1000 = vmatprep.mubr.bf16.mxu0 %v1620_v6 }
  0xc2   : > { %v1076_v22 = vpop.permute.xlu0 %1075  ;;  %1483 = vmatpush3.bf16.msra.mxu1 %v966_v20  ;;  %1484 = vmatprep.mubr.msk.bf16.mxu1 %vm1621_vm0, %v1619_v5  ;;  %v1078_v25 = vpop.permute.xlu1 %1077 }
  0xc3   : > { %v1081_v24 = vsel %vm1079_vm9, %v1074_v21, %v1076_v22  ;;  %1488 = vmatprep.subr.bf16.mxu1 %v1619_v5  ;;  %v1082_v26 = vsel %vm1079_vm9, %v1076_v22, %v1078_v25 }
  0xc4   : > { %1418 = vmatprep.subr.msk.bf16.mxu0 %vm216_vm2, %v1081_v24  ;;  %v1093_v30 = vsel %vm216_vm2, %v1082_v26, 0 }
  0xc6   : > { %v1199_v29 = vpop.permute.xlu0 %1198  ;;  %v1201_v31 = vpop.permute.xlu1 %1200 }
  0xc7   : > { %v1207_v33 = vsel %vm1206_vm10, %v1199_v29, %v1201_v31 }
  0xc8   : > { %1416 = vmatmul.mubr.msk.bf16.vlgmr.msra.gmra.mxu0 %vm212_vm3, %v176_v27  ;;  %1485 = vmatmul.mubr.msk.bf16.vlgmr.msra.gmra.mxu1 %vm212_vm3, %v176_v27  ;;  %v1214_v38 = vsel %vm216_vm2, %v1207_v33, 0 }
  0xc9   : > { %1110 = vmatpush1.bf16.msra.mxu0 %v1087_v28  ;;  %1127 = vmatprep.mubr.bf16.mxu0 %v1620_v6 }
  0xca   : > { %v1203_v32 = vpop.permute.xlu0 %1202  ;;  %1489 = vmatpush3.bf16.msra.mxu1 %v1093_v30  ;;  %1490 = vmatprep.mubr.msk.bf16.mxu1 %vm1621_vm0, %v1619_v5  ;;  %v1205_v35 = vpop.permute.xlu1 %1204 }
  0xcb   : > { %v1208_v34 = vsel %vm1206_vm10, %v1201_v31, %v1203_v32  ;;  %1494 = vmatprep.subr.bf16.mxu1 %v1619_v5  ;;  %v1209_v36 = vsel %vm1206_vm10, %v1203_v32, %v1205_v35 }
  0xcc   : > { %1421 = vmatprep.subr.msk.bf16.mxu0 %vm216_vm2, %v1208_v34  ;;  %v1220_v39 = vsel %vm216_vm2, %v1209_v36, 0 }
  0xd0   : > { %1419 = vmatmul.mubr.msk.bf16.vlgmr.msra.gmra.mxu0 %vm212_vm3, %v177_v37  ;;  %1491 = vmatmul.mubr.msk.bf16.vlgmr.msra.gmra.mxu1 %vm212_vm3, %v177_v37 }
  0xd1   : > { %1237 = vmatpush1.bf16.msra.mxu0 %v1214_v38  ;;  %1254 = vmatprep.mubr.bf16.mxu0 %v1620_v6 }
  0xd2   : > { %1495 = vmatpush3.bf16.msra.mxu1 %v1220_v39  ;;  %1496 = vmatprep.mubr.msk.bf16.mxu1 %vm1621_vm0, %v1619_v5 }
  0xd8   : > { %1422 = vmatmul.mubr.msk.bf16.vlgmr.msra.gmra.mxu0 %vm212_vm3, %v178_v40  ;;  %1497 = vmatmul.mubr.msk.bf16.vlgmr.msra.gmra.mxu1 %vm212_vm3, %v178_v40 }
 0x158   : > { %v260_v41 = vpop.f32.mrf.mxu0  ;;  %v301_v43 = vpop.f32.mrf.mxu1 }
 0x15a   : > { %v262_v42 = vpop.f32.mrf.mxu0  ;;  %v1450_v45 = vpop.f32.mrf.mxu1 }
 0x15c   : > { %v264_v44 = vpop.f32.mrf.mxu0  ;;  %v304_v46 = vpop.f32.mrf.mxu1 }
 0x15e   : > { %v265_v6 = vpop.f32.mrf.mxu0  ;;  %v1451_v47 = vpop.f32.mrf.mxu1 }
 0x160   : > { %v370_v48 = vpop.f32.mrf.mxu0  ;;  %v411_v50 = vpop.f32.mrf.mxu1 }
 0x161   : > { %v371_v28 = vadd.f32 %v370_v48, %v260_v41  ;;  %v412_v32 = vadd.f32 %v411_v50, %v301_v43 }
 0x162   : > { %v372_v49 = vpop.f32.mrf.mxu0  ;;  %v1456_v51 = vpop.f32.mrf.mxu1 }
 0x163   : > { %v373_v31 = vadd.f32 %v372_v49, %v262_v42 }
 0x164   : > { %v374_v5 = vpop.f32.mrf.mxu0  ;;  %v414_v53 = vpop.f32.mrf.mxu1 }
 0x166   : > { %v375_v52 = vpop.f32.mrf.mxu0  ;;  %v1457_v54 = vpop.f32.mrf.mxu1 }
 0x168   : > { %v494_v55 = vpop.f32.mrf.mxu0  ;;  %v535_v57 = vpop.f32.mrf.mxu1 }
 0x169   : > { %v541_v33 = vadd.f32 %v494_v55, %v371_v28  ;;  %v543_v37 = vadd.f32 %v535_v57, %v412_v32  ;;  %v1309_v57 = vpop.permute.xlu0 %1308 }
 0x16a   : > { %v496_v56 = vpop.f32.mrf.mxu0  ;;  %v1462_v59 = vpop.f32.mrf.mxu1 }
 0x16b   : > { %v542_v36 = vadd.f32 %v496_v56, %v373_v31 }
 0x16c   : > { %v498_v58 = vpop.f32.mrf.mxu0  ;;  %v538_v61 = vpop.f32.mrf.mxu1 }
 0x16e   : > { %v499_v60 = vpop.f32.mrf.mxu0  ;;  %v1463_v62 = vpop.f32.mrf.mxu1 }
 0x170   : > { %v621_v63 = vpop.f32.mrf.mxu0  ;;  %v662_v1 = vpop.f32.mrf.mxu1 }
 0x171   : > { %v668_v38 = vadd.f32 %v621_v63, %v541_v33  ;;  %v670_v45 = vadd.f32 %v662_v1, %v543_v37 }
 0x172   : > { %v623_v0 = vpop.f32.mrf.mxu0  ;;  %v1468_v3 = vpop.f32.mrf.mxu1 }
 0x173   : > { %v669_v44 = vadd.f32 %v623_v0, %v542_v36 }
 0x174   : > { %v625_v2 = vpop.f32.mrf.mxu0  ;;  %v665_v7 = vpop.f32.mrf.mxu1 }
 0x176   : > { %v626_v4 = vpop.f32.mrf.mxu0  ;;  %v1469_v8 = vpop.f32.mrf.mxu1 }
 0x178   : > { %v748_v9 = vpop.f32.mrf.mxu0  ;;  %v789_v11 = vpop.f32.mrf.mxu1 }
 0x179   : > { %v795_v6 = vadd.f32 %v748_v9, %v668_v38  ;;  %v797_v48 = vadd.f32 %v789_v11, %v670_v45 }
 0x17a   : > { %v750_v10 = vpop.f32.mrf.mxu0  ;;  %v1474_v13 = vpop.f32.mrf.mxu1 }
 0x17b   : > { %v796_v41 = vadd.f32 %v750_v10, %v669_v44 }
 0x17c   : > { %v752_v12 = vpop.f32.mrf.mxu0  ;;  %v792_v15 = vpop.f32.mrf.mxu1 }
 0x17e   : > { %v753_v14 = vpop.f32.mrf.mxu0  ;;  %v1475_v16 = vpop.f32.mrf.mxu1 }
 0x180   : > { %v875_v17 = vpop.f32.mrf.mxu0  ;;  %v916_v19 = vpop.f32.mrf.mxu1 }
 0x181   : > { %v922_v5 = vadd.f32 %v875_v17, %v795_v6  ;;  %v924_v50 = vadd.f32 %v916_v19, %v797_v48 }
 0x182   : > { %v877_v18 = vpop.f32.mrf.mxu0  ;;  %v1480_v21 = vpop.f32.mrf.mxu1 }
 0x183   : > { %v923_v49 = vadd.f32 %v877_v18, %v796_v41 }
 0x184   : > { %v879_v20 = vpop.f32.mrf.mxu0  ;;  %v919_v23 = vpop.f32.mrf.mxu1 }
 0x186   : > { %v880_v22 = vpop.f32.mrf.mxu0  ;;  %v1481_v24 = vpop.f32.mrf.mxu1 }
 0x188   : > { %v1002_v25 = vpop.f32.mrf.mxu0  ;;  %v1043_v27 = vpop.f32.mrf.mxu1 }
 0x189   : > { %v1049_v51 = vadd.f32 %v1002_v25, %v922_v5  ;;  %v1051_v55 = vadd.f32 %v1043_v27, %v924_v50 }
 0x18a   : > { %v1004_v26 = vpop.f32.mrf.mxu0  ;;  %v1486_v30 = vpop.f32.mrf.mxu1 }
 0x18b   : > { %v1050_v54 = vadd.f32 %v1004_v26, %v923_v49 }
 0x18c   : > { %v1006_v29 = vpop.f32.mrf.mxu0  ;;  %v1046_v35 = vpop.f32.mrf.mxu1 }
 0x18e   : > { %v1007_v34 = vpop.f32.mrf.mxu0  ;;  %v1487_v39 = vpop.f32.mrf.mxu1 }
 0x190   : > { %v1129_v40 = vpop.f32.mrf.mxu0  ;;  %v1170_v47 = vpop.f32.mrf.mxu1 }
 0x191   : > { %v1176_v56 = vadd.f32 %v1129_v40, %v1049_v51  ;;  %v1178_v61 = vadd.f32 %v1170_v47, %v1051_v55 }
 0x192   : > { %v1131_v46 = vpop.f32.mrf.mxu0  ;;  %v1492_v43 = vpop.f32.mrf.mxu1 }
 0x193   : > { %v1177_v60 = vadd.f32 %v1131_v46, %v1050_v54 }
 0x194   : > { %v1133_v42 = vpop.f32.mrf.mxu0  ;;  %v1173_v53 = vpop.f32.mrf.mxu1 }
 0x196   : > { %v1134_v52 = vpop.f32.mrf.mxu0  ;;  %v1493_v58 = vpop.f32.mrf.mxu1 }
 0x198   : > { %v1256_v59 = vpop.f32.mrf.mxu0  ;;  %v1297_v0 = vpop.f32.mrf.mxu1 }
 0x199   : > { %v1303_v62 = vadd.f32 %v1256_v59, %v1176_v56  ;;  %v1305_v3 = vadd.f32 %v1297_v0, %v1178_v61 }
 0x19a   : > { %v1258_v63 = vpop.f32.mrf.mxu0  ;;  %v1498_v7 = vpop.f32.mrf.mxu1 }
 0x19b   : > { %v1311_v1 = vadd.f32 %v1309_v57, %v1303_v62  ;;  %v1304_v2 = vadd.f32 %v1258_v63, %v1177_v60  ;;  %v1313_v9 = vadd.f32 %v1309_v57, %v1305_v3 }
 0x19c   : > { %v1260_v4 = vpop.f32.mrf.mxu0  ;;  %v1300_v11 = vpop.f32.mrf.mxu1 }
 0x19d   : > { %1314 = vst [vmem:[%s163_s24] sm:$0xff] %v1311_v1  ;;  %v1312_v8 = vadd.f32 %v1309_v57, %v1304_v2  ;;  %1316 = vst [vmem:[%s163_s24 + $0x10] sm:$0xff] %v1313_v9 }
 0x19e   : > { %v1261_v10 = vpop.f32.mrf.mxu0  ;;  %v1499_v12 = vpop.f32.mrf.mxu1 }
 0x19f   : > { %1315 = vst [vmem:[%s163_s24 + $0x8] sm:$0xff] %v1312_v8 }
 0x1a0   : > { %1569 = shalt.err (!%p1566_p3)
}
 0x1a1   : > { %s1570_s6 = scalar_lea.hbm %s1831_s28, 384  ;;  %s1574_s9 = scalar_lea.hbm %s1877_s3, 768 }
 0x1a2   : > { %p1571_p4 = scmp.ne.s32.totalorder %s1831_s28, %s1570_s6  ;;  %p1575_p9 = scmp.lt.s32.totalorder %s1831_s28, %s1877_s3 }
 0x1a3   : > { %p1576_p10 = scmp.lt.s32.totalorder %s1574_s9, %s1570_s6 }
 0x1a4   : > { %p1572_p7 = pnand %p1571_p4, %p1689_p5 }
 0x1a5   : > { %p1577_p11 = por %p1576_p10, %p1575_p9 }
 0x1a6   : > { %p1573_p8 = pneg %p1572_p7 }
 0x1a8   : > { %p1578_p12 = pnand %p1577_p11, %p1573_p8 }
 0x1aa   : > { %1581 = shalt.err (!%p1578_p12)
}
 0x1ab   : > { %1502 = dma.vmem_to_hbm [thread:$0]  (%p1689_p5), %s1833_s25, 384, %s1831_s28, %s1318_s16  }
 0x1ac PF: > { %p1508_p13 = scmp.ge.s32.totalorder %s1616_s15, 2  ;;  %s1344_s17 = sand.u32 1, %s1604_s12  }
 0x1ad   : > { %s1345_s19 = scalar_lea.sflag [#allocation3], %s1344_s17 }
 0x1ae   : > { %p1505_p0 = pnand %p1508_p13, %p1693_p6 }
 0x1b0   : > { %p1506_p1 = pneg %p1505_p0 }
 0x1b2   : > { %1599 = dma.done.wait (%p1506_p1), %s1345_s19, 384  }
 0x1b3   : > { %1601 = vsyncadd (%p1506_p1), %s1345_s19, 4294966912  ;;  %p13_p2 = scmp.ge.s32.totalorder %s1676_s18, 4   ;;  %s1880_s12 = smov %s1608_s13 }
 0x1b4   : > { %s1881_s13 = smov %s1612_s14  ;;  %s1882_s14 = smov %s1687_s21 }
 0x1b5   : > { %s1883_s15 = smov %s1676_s18  ;;  %15 = sbr.rel (!%p13_p2) target bundleno = 3 (0x3), region = 67 }
 0x1ba   :  { %1350 = vsyncpa [#allocation3], 1 }
 0x1bb   :  { %1352 = vsyncpa [#allocation3 + $0x1], 1 }

</bundles_post_ra>
